<compile_context>
chip_gen: v7x
topology: tpu7x:2x2x1
jax: 0.10.0
libtpu: 0.0.40
codegen_flags: <defaults>
</compile_context>

<pallas_src>
import math

import jax
import jax.numpy as jnp
import numpy as np
from jax import lax
from jax.experimental import pallas as pl
from jax.experimental.pallas import tpu as pltpu


def _gelu_tanh(x):
    # Matches the repo's custom GELU module (BERT-style tanh approximation).
    c = math.sqrt(2.0 / math.pi)
    return 0.5 * x * (1.0 + jnp.tanh(c * (x + 0.044715 * x * x * x)))


def _round_up(n, m):
    return ((n + m - 1) // m) * m


def _vmem_caps():
    """(working-set budget, vmem_limit_bytes) derived from the chip's VMEM size."""
    cap = 64 * 1024 * 1024  # conservative fallback (v7x per-TensorCore VMEM)
    try:
        info = pltpu.get_tpu_info()
        cap = int(getattr(info, "vmem_capacity_bytes", cap)) or cap
    except Exception:
        pass
    budget = int(0.62 * cap)                               # tile shrink-loop target
    limit = int(min(0.78 * cap, cap - 8 * 1024 * 1024))    # scoped VMEM limit
    limit = max(limit, budget + 4 * 1024 * 1024)
    return budget, limit


def _check_resident_w(D, xsize, budget):
    # TODO(synk): add a K-tiled grid axis streaming W in (Dk, D) chunks for very
    # large d_model; for now fail loudly instead of silently blowing up VMEM.
    if 2 * D * D * xsize > budget // 2:
        raise ValueError(
            f"d_model={D} too large to keep the linear weight resident in VMEM "
            f"(needs {2 * D * D * xsize} bytes, budget {budget}).")


# ---------------------------------------------------------------------------
# Dense path (candidates=None):  logits = GELU(x @ W + b) @ E.T + bias
# Grid: (batch tiles, vocab tiles).  h computed once per batch tile (j == 0)
# into a VMEM scratch held in the MXU input dtype.
# ---------------------------------------------------------------------------
def _dense_head_kernel(x_ref, w_ref, wb_ref, emb_ref, bias_ref, out_ref, h_ref):
    @pl.when(pl.program_id(1) == 0)
    def _():
        h = jnp.dot(x_ref[...].astype(w_ref.dtype), w_ref[...],
                    preferred_element_type=jnp.float32)
        h_ref[...] = _gelu_tanh(h + wb_ref[...].astype(jnp.float32)).astype(h_ref.dtype)

    # Contract last dims: (tm, D) x (tv, D) -> (tm, tv); no transpose of the emb tile.
    logits = lax.dot_general(
        h_ref[...], emb_ref[...],
        dimension_numbers=(((1,), (1,)), ((), ())),
        preferred_element_type=jnp.float32)
    out_ref[...] = (logits + bias_ref[...].astype(jnp.float32)).astype(out_ref.dtype)


def dot_product_head_dense(x, w, wb, emb, bias, *, tm=768, tv=512,
                           use_bf16=True, out_dtype=jnp.float32):
    B, D = x.shape
    V = emb.shape[0]

    if use_bf16:
        # bf16 MXU inputs; GELU / bias / accumulation stay in f32.
        x, w, emb = (t.astype(jnp.bfloat16) for t in (x, w, emb))

    esize = jnp.dtype(emb.dtype).itemsize
    xsize = jnp.dtype(x.dtype).itemsize
    osize = jnp.dtype(out_dtype).itemsize

    budget, vmem_limit = _vmem_caps()
    _check_resident_w(D, xsize, budget)

    # Clamp tiles to the (aligned) problem size.
    b_al = _round_up(B, 8)
    tm = max(8, min(tm, b_al))
    # Guarantee >= 2 batch tiles when the grid would otherwise collapse to one,
    # so the "parallel" batch axis can shard across v7x's 2 TensorCores.
    if b_al >= 16 and b_al <= tm:
        tm = max(8, ((b_al // 2) // 8) * 8)
    tv = max(128, min(tv, _round_up(V, 128)))

    # TODO(synk): mark the constant-index W/wb BlockSpecs pipeline_mode=pl.Buffered(1)
    # once single-buffering of constant blocks is verified on the target jax version.
    def _vmem_bytes(tm_, tv_):
        return (2 * tv_ * D * esize          # emb tile, double-buffered (dominant stream)
                + 2 * tm_ * tv_ * osize      # out tile, double-buffered
                + 2 * tv_ * 4                # output-bias tile
                + 2 * D * D * xsize          # resident W (pipeline still holds 2 bufs)
                + 2 * tm_ * D * xsize        # x tile
                + 2 * D * 4                  # wb
                + tm_ * D * esize)           # h scratch (MXU-input dtype)

    # Shrink the vocab tile first (keeps tm, i.e. arithmetic intensity on the
    # re-streamed emb table, as large as possible), then tm as a last resort.
    while _vmem_bytes(tm, tv) > budget and (tv > 128 or tm > 8):
        if tv > 128:
            tv = max(128, ((tv // 2) // 128) * 128)
        else:
            tm = max(8, ((tm // 2) // 8) * 8)

    Bp, Vp = _round_up(B, tm), _round_up(V, tv)
    if Bp != B:
        x = jnp.pad(x, ((0, Bp - B), (0, 0)))
    if Vp != V:
        emb = jnp.pad(emb, ((0, Vp - V), (0, 0)))
        bias = jnp.pad(bias, ((0, 0), (0, Vp - V)))

    out = pl.pallas_call(
        _dense_head_kernel,
        out_shape=jax.ShapeDtypeStruct((Bp, Vp), out_dtype),
        grid_spec=pltpu.PrefetchScalarGridSpec(
            num_scalar_prefetch=0,
            grid=(Bp // tm, Vp // tv),
            in_specs=[
                pl.BlockSpec((tm, D), lambda i, j: (i, 0)),   # x tile
                pl.BlockSpec((D, D), lambda i, j: (0, 0)),    # linear weight (resident)
                pl.BlockSpec((1, D), lambda i, j: (0, 0)),    # linear bias
                pl.BlockSpec((tv, D), lambda i, j: (j, 0)),   # embedding tile (streamed)
                pl.BlockSpec((1, tv), lambda i, j: (0, j)),   # output-bias tile
            ],
            out_specs=pl.BlockSpec((tm, tv), lambda i, j: (i, j)),
            scratch_shapes=[pltpu.VMEM((tm, D), emb.dtype)],   # h scratch
        ),
        compiler_params=pltpu.CompilerParams(
            dimension_semantics=("parallel", "arbitrary"),
            vmem_limit_bytes=vmem_limit,
        ),
    )(x, w, wb, emb, bias)
    return out[:B, :V]


# ---------------------------------------------------------------------------
# Candidates path:
#   h = GELU(x @ W + b);  logits[b, c] = sum_d h[b, d] * E[cand[b, c], d] + bias[0, cand[b, c]]
# Gather is done in-kernel: candidates scalar-prefetched into SMEM, emb stays in
# HBM (pl.ANY) and per-row DMAs fill a (tm, C, D) VMEM scratch, overlapped with
# the x@W+GELU compute.  D-contraction on the MXU via a batched einsum.
# ---------------------------------------------------------------------------
def _cand_head_kernel(cand_ref, x_ref, w_ref, wb_ref, biasc_ref, emb_hbm,
                      out_ref, ebuf, sem):
    i = pl.program_id(0)
    tm, C, _D = ebuf.shape

    # Start the data-dependent gather: one row DMA per (local row, candidate).
    def _issue_row(b, carry):
        def _issue_one(c, carry2):
            row = cand_ref[i * tm + b, c]
            pltpu.make_async_copy(
                emb_hbm.at[pl.ds(row, 1), :],
                ebuf.at[b, pl.ds(c, 1), :],
                sem,
            ).start()
            return carry2
        return lax.fori_loop(0, C, _issue_one, carry)
    lax.fori_loop(0, tm, _issue_row, 0)

    # Overlap: compute h = GELU(x @ W + b) while the gather DMAs are in flight.
    h = jnp.dot(x_ref[...].astype(w_ref.dtype), w_ref[...],
                preferred_element_type=jnp.float32)
    h = _gelu_tanh(h + wb_ref[...].astype(jnp.float32))            # (tm, D) f32

    # Wait for every gather DMA (all copies have identical size / semaphore).
    def _wait_row(b, carry):
        def _wait_one(c, carry2):
            pltpu.make_async_copy(
                emb_hbm.at[pl.ds(0, 1), :],
                ebuf.at[b, pl.ds(c, 1), :],
                sem,
            ).wait()
            return carry2
        return lax.fori_loop(0, C, _wait_one, carry)
    lax.fori_loop(0, tm, _wait_row, 0)

    # Batched MXU contraction: (tm, 1, D) x (tm, C, D) -> (tm, 1, C).
    # TODO(synk): if MXU push/drain becomes binding (M=1 per batched matmul),
    # switch to a VPU multiply + chunked D-reduction.
    h3 = h.astype(ebuf.dtype)[:, None, :]
    s = jnp.einsum('bqd,bcd->bqc', h3, ebuf[...],
                   preferred_element_type=jnp.float32)
    out_ref[...] = (s[:, 0, :] + biasc_ref[...].astype(jnp.float32)
                    ).astype(out_ref.dtype)


def dot_product_head_candidates(x, w, wb, emb, bias, candidates, *, tm=64,
                                use_bf16=True, out_dtype=jnp.float32):
    B, D = x.shape
    C = candidates.shape[1]

    if use_bf16:
        x, w, emb = (t.astype(jnp.bfloat16) for t in (x, w, emb))

    # Per-candidate bias gather is tiny ((B, C) f32) -> keep it in XLA.
    bias_c = jnp.take(bias[0], candidates, axis=0).astype(jnp.float32)   # (B, C)
    candidates = candidates.astype(jnp.int32)

    esize = jnp.dtype(emb.dtype).itemsize
    xsize = jnp.dtype(x.dtype).itemsize

    budget, vmem_limit = _vmem_caps()
    _check_resident_w(D, xsize, budget)

    b_al = _round_up(B, 8)
    tm = max(8, min(tm, b_al))
    if b_al >= 16 and b_al <= tm:          # >=2 batch tiles for v7x megacore
        tm = max(8, ((b_al // 2) // 8) * 8)

    def _vmem_bytes(tm_):
        return (tm_ * C * D * esize          # gathered emb scratch (single buffer)
                + 2 * tm_ * D * xsize        # x tile, double-buffered
                + 2 * D * D * xsize          # W
                + 2 * D * 4                  # wb
                + 2 * tm_ * C * 4            # gathered-bias tile
                + 2 * tm_ * C * 4            # out tile
                + tm_ * D * 4)               # h live value headroom

    while _vmem_bytes(tm) > budget and tm > 8:
        tm = max(8, ((tm // 2) // 8) * 8)

    Bp = _round_up(B, tm)
    if Bp != B:
        pad = Bp - B
        x = jnp.pad(x, ((0, pad), (0, 0)))
        candidates = jnp.pad(candidates, ((0, pad), (0, 0)))   # 0 is a valid row index
        bias_c = jnp.pad(bias_c, ((0, pad), (0, 0)))

    # TODO(synk): for very large B*C, tile `candidates` itself instead of
    # scalar-prefetching the whole (B, C) table into SMEM, and double-buffer the
    # gather across grid steps (currently it only overlaps the in-step x@W+GELU).
    out = pl.pallas_call(
        _cand_head_kernel,
        out_shape=jax.ShapeDtypeStruct((Bp, C), out_dtype),
        grid_spec=pltpu.PrefetchScalarGridSpec(
            num_scalar_prefetch=1,
            grid=(Bp // tm,),
            in_specs=[
                pl.BlockSpec((tm, D), lambda i, cand: (i, 0)),   # x tile
                pl.BlockSpec((D, D), lambda i, cand: (0, 0)),    # linear weight
                pl.BlockSpec((1, D), lambda i, cand: (0, 0)),    # linear bias
                pl.BlockSpec((tm, C), lambda i, cand: (i, 0)),   # gathered bias
                pl.BlockSpec(memory_space=pl.ANY),               # emb stays in HBM
            ],
            out_specs=pl.BlockSpec((tm, C), lambda i, cand: (i, 0)),
            scratch_shapes=[
                pltpu.VMEM((tm, C, D), emb.dtype),               # gathered emb rows
                pltpu.SemaphoreType.DMA(()),
            ],
        ),
        compiler_params=pltpu.CompilerParams(
            dimension_semantics=("parallel",),
            vmem_limit_bytes=vmem_limit,
        ),
    )(candidates, x, w, wb, bias_c, emb)
    return out[:B]


# ---------------------------------------------------------------------------
# Pure-JAX reference (mirrors the PyTorch forward exactly)
# ---------------------------------------------------------------------------
def reference_forward(x, w, wb, emb, bias, candidates=None):
    h = _gelu_tanh(x @ w + wb)
    if candidates is not None:
        emb_c = jnp.take(emb, candidates, axis=0)              # (B, C, D)
        logits = (h[:, None, :] * emb_c).sum(-1)               # (B, C)
        logits = logits + jnp.take(bias[0], candidates, axis=0)
    else:
        logits = h @ emb.T + bias
    return logits


if __name__ == "__main__":
    # Small, deliberately "awkward" shapes (B not a multiple of the tile, V not a
    # multiple of 128) to exercise padding, the 2-D vocab-tiled dense grid and the
    # in-kernel DMA gather.
    B, D, V, C = 20, 128, 300, 64   # batch, d_model, d_out (vocab), n_candidates

    key = jax.random.PRNGKey(0)
    kx, kw, kb, ke, kc = jax.random.split(key, 5)

    x = jax.random.normal(kx, (B, D), dtype=jnp.float32)
    # Linear(d_model, d_model): PyTorch stores weight as (out, in); we keep W = weight.T
    # so the kernel computes x @ W + b directly.
    lim = 1.0 / math.sqrt(D)
    w = jax.random.uniform(kw, (D, D), minval=-lim, maxval=lim, dtype=jnp.float32)
    wb = jax.random.uniform(kb, (1, D), minval=-lim, maxval=lim, dtype=jnp.float32)
    emb = jax.random.normal(ke, (V, D), dtype=jnp.float32) * 0.02  # embedding.weight
    bias = jnp.zeros((1, V), dtype=jnp.float32)                    # nn.Parameter(zeros(1, d_out))
    candidates = jax.random.randint(kc, (B, C), 0, V, dtype=jnp.int32)

    ref_dense = reference_forward(x, w, wb, emb, bias)
    ref_cand = reference_forward(x, w, wb, emb, bias, candidates)

    # --- exact (f32) paths at tight tolerance; tiny tiles exercise the grids ---
    out_dense_f32 = jax.block_until_ready(
        dot_product_head_dense(x, w, wb, emb, bias, tm=8, tv=128, use_bf16=False))
    np.testing.assert_allclose(np.asarray(out_dense_f32), np.asarray(ref_dense),
                               rtol=1e-5, atol=1e-5)

    out_cand_f32 = jax.block_until_ready(
        dot_product_head_candidates(x, w, wb, emb, bias, candidates,
                                    tm=8, use_bf16=False))
    np.testing.assert_allclose(np.asarray(out_cand_f32), np.asarray(ref_cand),
                               rtol=1e-5, atol=1e-5)

    # --- production defaults (bf16 MXU inputs, auto tiles) at loose tolerance ---
    out_dense_bf16 = jax.block_until_ready(
        dot_product_head_dense(x, w, wb, emb, bias))
    np.testing.assert_allclose(np.asarray(out_dense_bf16), np.asarray(ref_dense),
                               rtol=5e-2, atol=5e-2)

    out_cand_bf16 = jax.block_until_ready(
        dot_product_head_candidates(x, w, wb, emb, bias, candidates))
    np.testing.assert_allclose(np.asarray(out_cand_bf16), np.asarray(ref_cand),
                               rtol=5e-2, atol=5e-2)

    print("KERNEL_OK")
</pallas_src>

<mosaic_0001>
module attributes {stable_mosaic.version = 11 : i64} {
  func.func @_dense_head_kernel(%arg0: i32, %arg1: i32, %arg2: memref<8x128xf32, #tpu.memory_space<vmem>>, %arg3: memref<128x128xf32, #tpu.memory_space<vmem>>, %arg4: memref<1x128xf32, #tpu.memory_space<vmem>>, %arg5: memref<128x128xf32, #tpu.memory_space<vmem>>, %arg6: memref<1x128xf32, #tpu.memory_space<vmem>>, %arg7: memref<8x128xf32, #tpu.memory_space<vmem>>, %arg8: memref<8x128xf32, #tpu.memory_space<vmem>>) attributes {dimension_semantics = [#tpu.dimension_semantics<parallel>, #tpu.dimension_semantics<arbitrary>], iteration_bounds = array<i64: 3, 3>, scalar_prefetch = 0 : i64, scratch_operands = 1 : i64, tpu.core_type = #tpu.core_type<tc>, window_params = [{transform_indices = @transform_0, window_bounds = array<i64: 8, 128>}, {pipeline_mode = #tpu.pipeline_mode<synchronous>, transform_indices = @transform_1, window_bounds = array<i64: 128, 128>}, {pipeline_mode = #tpu.pipeline_mode<synchronous>, transform_indices = @transform_2, window_bounds = array<i64: 1, 128>}, {transform_indices = @transform_3, window_bounds = array<i64: 128, 128>}, {transform_indices = @transform_4, window_bounds = array<i64: 1, 128>}, {transform_indices = @transform_5, window_bounds = array<i64: 8, 128>}]} {
    %c0_i32 = arith.constant 0 : i32
    %0 = arith.cmpi eq, %arg1, %c0_i32 : i32
    %1 = arith.extui %0 : i1 to i32
    %c0_i32_0 = arith.constant 0 : i32
    %2 = arith.cmpi ne, %1, %c0_i32_0 : i32
    scf.if %2 {
      %c0_8 = arith.constant 0 : index
      %c0_9 = arith.constant 0 : index
      %10 = vector.load %arg2[%c0_8, %c0_9] : memref<8x128xf32, #tpu.memory_space<vmem>>, vector<8x128xf32>
      %c0_10 = arith.constant 0 : index
      %c0_11 = arith.constant 0 : index
      %11 = vector.load %arg3[%c0_10, %c0_11] : memref<128x128xf32, #tpu.memory_space<vmem>>, vector<128x128xf32>
      %cst_12 = arith.constant dense<0.000000e+00> : vector<8x128xf32>
      %12 = tpu.matmul %10, %11, %cst_12 {dimension_numbers = #tpu.dot_dimension_numbers<[1], [0], [0], [1], [0, 0, 1, 1], [], []>} : vector<8x128xf32>, vector<128x128xf32>, vector<8x128xf32> -> vector<8x128xf32>
      %c0_13 = arith.constant 0 : index
      %c0_14 = arith.constant 0 : index
      %13 = vector.load %arg4[%c0_13, %c0_14] : memref<1x128xf32, #tpu.memory_space<vmem>>, vector<1x128xf32>
      %14 = vector.broadcast %13 : vector<1x128xf32> to vector<8x128xf32>
      %15 = arith.addf %12, %14 : vector<8x128xf32>
      %cst_15 = arith.constant 5.000000e-01 : f32
      %16 = vector.broadcast %cst_15 : f32 to vector<8x128xf32>
      %17 = arith.mulf %16, %15 : vector<8x128xf32>
      %cst_16 = arith.constant 4.471500e-02 : f32
      %18 = vector.broadcast %cst_16 : f32 to vector<8x128xf32>
      %19 = arith.mulf %18, %15 : vector<8x128xf32>
      %20 = arith.mulf %19, %15 : vector<8x128xf32>
      %21 = arith.mulf %20, %15 : vector<8x128xf32>
      %22 = arith.addf %15, %21 : vector<8x128xf32>
      %cst_17 = arith.constant 0.797884583 : f32
      %23 = vector.broadcast %cst_17 : f32 to vector<8x128xf32>
      %24 = arith.mulf %23, %22 : vector<8x128xf32>
      %25 = math.tanh %24 : vector<8x128xf32>
      %cst_18 = arith.constant 1.000000e+00 : f32
      %26 = vector.broadcast %cst_18 : f32 to vector<8x128xf32>
      %27 = arith.addf %26, %25 : vector<8x128xf32>
      %28 = arith.mulf %17, %27 : vector<8x128xf32>
      %c0_19 = arith.constant 0 : index
      %c0_20 = arith.constant 0 : index
      %29 = vector.load %arg8[%c0_19, %c0_20] : memref<8x128xf32, #tpu.memory_space<vmem>>, vector<8x128xf32>
      tpu.vector_store %arg8[%c0_19, %c0_20], %28 {strides = array<i32>} : memref<8x128xf32, #tpu.memory_space<vmem>>, vector<8x128xf32>,
    } else {
    }
    %c0 = arith.constant 0 : index
    %c0_1 = arith.constant 0 : index
    %3 = vector.load %arg8[%c0, %c0_1] : memref<8x128xf32, #tpu.memory_space<vmem>>, vector<8x128xf32>
    %c0_2 = arith.constant 0 : index
    %c0_3 = arith.constant 0 : index
    %4 = vector.load %arg5[%c0_2, %c0_3] : memref<128x128xf32, #tpu.memory_space<vmem>>, vector<128x128xf32>
    %cst = arith.constant dense<0.000000e+00> : vector<8x128xf32>
    %5 = tpu.matmul %3, %4, %cst {dimension_numbers = #tpu.dot_dimension_numbers<[1], [1], [0], [0], [0, 0, 1, 0], [], []>} : vector<8x128xf32>, vector<128x128xf32>, vector<8x128xf32> -> vector<8x128xf32>
    %c0_4 = arith.constant 0 : index
    %c0_5 = arith.constant 0 : index
    %6 = vector.load %arg6[%c0_4, %c0_5] : memref<1x128xf32, #tpu.memory_space<vmem>>, vector<1x128xf32>
    %7 = vector.broadcast %6 : vector<1x128xf32> to vector<8x128xf32>
    %8 = arith.addf %5, %7 : vector<8x128xf32>
    %c0_6 = arith.constant 0 : index
    %c0_7 = arith.constant 0 : index
    %9 = vector.load %arg7[%c0_6, %c0_7] : memref<8x128xf32, #tpu.memory_space<vmem>>, vector<8x128xf32>
    tpu.vector_store %arg7[%c0_6, %c0_7], %8 {strides = array<i32>} : memref<8x128xf32, #tpu.memory_space<vmem>>, vector<8x128xf32>,
    return
  }
  func.func @transform_0(%arg0: i32, %arg1: i32) -> (i32, i32) {
    %c0_i32 = arith.constant 0 : i32
    %c0_i32_0 = arith.constant 0 : i32
    return %arg0, %c0_i32 : i32, i32
  }
  func.func @transform_1(%arg0: i32, %arg1: i32) -> (i32, i32) {
    %c0_i32 = arith.constant 0 : i32
    %c0_i32_0 = arith.constant 0 : i32
    %c0_i32_1 = arith.constant 0 : i32
    return %c0_i32, %c0_i32_0 : i32, i32
  }
  func.func @transform_2(%arg0: i32, %arg1: i32) -> (i32, i32) {
    %c0_i32 = arith.constant 0 : i32
    %c0_i32_0 = arith.constant 0 : i32
    %c0_i32_1 = arith.constant 0 : i32
    return %c0_i32, %c0_i32_0 : i32, i32
  }
  func.func @transform_3(%arg0: i32, %arg1: i32) -> (i32, i32) {
    %c0_i32 = arith.constant 0 : i32
    %c0_i32_0 = arith.constant 0 : i32
    return %arg1, %c0_i32 : i32, i32
  }
  func.func @transform_4(%arg0: i32, %arg1: i32) -> (i32, i32) {
    %c0_i32 = arith.constant 0 : i32
    %c0_i32_0 = arith.constant 0 : i32
    return %c0_i32, %arg1 : i32, i32
  }
  func.func @transform_5(%arg0: i32, %arg1: i32) -> (i32, i32) {
    %c0_i32 = arith.constant 0 : i32
    return %arg0, %arg1 : i32, i32
  }
}

</mosaic_0001>

<bundles_post_ra>
// kernel: tpu_custom_call.1
= control target key start
LH: loop header
LB: loop body
LE: loop exit
PB: predicated region body
PF: predicated region fallthrough
CT: control target
= control target key end

     0   :  { %s1706_s0 = inlined_call_operand.hbm [shape: f32[24,128], index: 0, kind: input, shape index: {}]   ;;  %s1707_s1 = inlined_call_operand.hbm [shape: f32[128,128], index: 1, kind: input, shape index: {}]   ;;  %s1708_s2 = inlined_call_operand.vmem [shape: f32[1,128], index: 2, kind: input, shape index: {}]   ;;  %s1709_s3 = inlined_call_operand.hbm [shape: f32[384,128], index: 3, kind: input, shape index: {}]   ;;  %s1710_s4 = inlined_call_operand.vmem [shape: f32[1,384], index: 4, kind: input, shape index: {}]   ;;  %s1711_s5 = inlined_call_operand.hbm [shape: f32[24,384], index: 5, kind: output, shape index: {}]  }
   0x1   :  { %1727 = sst [smem:[#allocation26_spill]] %s1706_s0 }
   0x2   :  { %1728 = sst [smem:[#allocation27_spill]] %s1708_s2 }
   0x3   :  { %1729 = sst [smem:[#allocation28_spill]] %s1710_s4 }
   0x4   :  { %1730 = sst [smem:[#allocation29_spill]] %s1711_s5 }
   0x5   :  { %10 = vsyncpa [#allocation4], 0 }
   0x6   :  { %12 = vsyncpa [#allocation4 + $0x1], 0 }
   0x7   :  { %13 = vsyncpa [#allocation7], 0 }
   0x8   :  { %14 = vsyncpa [#allocation5], 0 }
   0x9   :  { %16 = vsyncpa [#allocation5 + $0x1], 0  ;;  %s1276_s18 = smov 0   ;;  %s1278_s19 = smov 0  }
   0xa   :  { %s1280_s20 = smov 0   ;;  %s1282_s21 = smov 0  }
   0xb   :  { %s1284_s22 = smov 0   ;;  %s1286_s23 = smov 0  }
   0xc   :  { %s1288_s24 = smov 0   ;;  %s1290_s25 = smov 0  }
   0xd   :  { %s1292_s26 = smov 0   ;;  %s1294_s27 = smov 0  }
   0xe   :  { %s1296_s28 = smov 0   ;;  %s1298_s29 = smov 0  }
   0xf   :  { %s1300_s30 = smov 0   ;;  %s1302_s6 = smov 0  }
  0x10 LB: > { %1731 = sst [smem:[#allocation14_spill]] %s1188_s20  ;;  %s31_s7 = sadd.s32 1, %s1224_s29  ;;  %s1232_s6 = sphi %s1302_s6, %s22_s6   ;;  %s1228_s30 = sphi %s1300_s30, %s1781_s30   ;;  %s1224_s29 = sphi %s1298_s29, %s1789_s29   ;;  %s1220_s28 = sphi %s1296_s28, %s1779_s28   ;;  %s1216_s27 = sphi %s1294_s27, %s1778_s27   ;;  %s1212_s26 = sphi %s1292_s26, %s1777_s26   ;;  %s1208_s25 = sphi %s1290_s25, %s1788_s25   ;;  %s1204_s24 = sphi %s1288_s24, %s1787_s24   ;;  %s1200_s23 = sphi %s1286_s23, %s1775_s23   ;;  %s1196_s22 = sphi %s1284_s22, %s1786_s22   ;;  %s1192_s21 = sphi %s1282_s21, %s1785_s21   ;;  %s1188_s20 = sphi %s1280_s20, %s1773_s20   ;;  %s1184_s19 = sphi %s1278_s19, %s1784_s19   ;;  %s1180_s18 = sphi %s1276_s18, %s1783_s18  }
  0x11   : > { %1732 = sst [smem:[#allocation15_spill]] %s1200_s23  ;;  %s34_s8 = sadd.s32 1, %s1228_s30 }
  0x12   : > { %1733 = sst [smem:[#allocation16_spill]] %s1212_s26  ;;  %p32_p0 = scmp.ge.s32.totalorder %s31_s7, 3 }
  0x13   : > { %1734 = sst [smem:[#allocation17_spill]] %s1216_s27  ;;  %s41_s9 = sadd.s32 1, %s1212_s26 }
  0x14   : > { %1735 = sst [smem:[#allocation18_spill]] %s1220_s28  ;;  %p48_p1 = scmp.ne.s32.totalorder %s1212_s26, %s1208_s25 }
  0x15   : > { %1736 = sst [smem:[#allocation19_spill]] %s1224_s29  ;;  %p49_p2 = scmp.eq.s32.totalorder %s1232_s6, 0 }
  0x16   : > { %1737 = sst [smem:[#allocation20_spill]] %s1228_s30  ;;  %s1791_s7 = smov (%p32_p0, %s31_s7), 0 }
  0x17   : > { %1738 = sst [smem:[#allocation21_spill]] %s1791_s7  ;;  %s1793_s8 = smov (!%p32_p0, %s34_s8), %s1228_s30 }
  0x18   : > { %p1357_p3 = por %p49_p2, %p48_p1  ;;  %p36_p5 = scmp.ge.s32.totalorder %s1793_s8, 3 }
  0x19   : > { %s106_s11 = ssub.s32 %s1224_s29, %s1791_s7  ;;  %s109_s12 = sadd.s32 1, %s1200_s23 }
  0x1a   : > { %p107_p6 = scmp.eq.s32.totalorder %s106_s11, 0  ;;  %s1795_s8 = smov (%p36_p5, %s1793_s8), 0 }
  0x1b   : > { %1740 = sst [smem:[#allocation22_spill]] %s1795_s8  ;;  %s38_s14 = ssub.s32 %s1228_s30, %s1795_s8 }
  0x1c   : > { %s1369_s13 = scalar_select %p107_p6, %s1200_s23, %s109_s12  }
  0x1d   : > { %p116_p7 = scmp.ne.s32.totalorder %s1200_s23, %s1196_s22  ;;  %p39_p8 = scmp.eq.s32.totalorder %s38_s14, 0 }
  0x1e   : > { %1741 = sst [smem:[#allocation23_spill]] %s1369_s13  ;;  %s160_s16 = sor.u32 %s106_s11, %s38_s14 }
  0x1f   : > { %p1379_p10 = por %p116_p7, %p49_p2  ;;  %p161_p11 = scmp.eq.s32.totalorder %s160_s16, 0 }
  0x20   : > { %s1384_s17 = scalar_select %p39_p8, %s1212_s26, %s41_s9  }
  0x21   : > { %s163_s7 = sadd.s32 1, %s1188_s20  ;;  %p864_p12 = scmp.lt.s32.totalorder %s1232_s6, 9 }
  0x22   : > { %1743 = sst [smem:[#allocation24_spill]] %s1384_s17  ;;  %s216_s12 = sand.u32 1, %s1232_s6  }
  0x23   : > { %s1389_s5 = scalar_select %p161_p11, %s1188_s20, %s163_s7  }
  0x24   : > { %s218_s8 = sand.u32 1, %s1212_s26   ;;  %s668_s28 = sshll.u32 %s1228_s30, 7 }
  0x25   : > { %1744 = sst [smem:[#allocation25_spill]] %s1389_s5  ;;  %s667_s13 = sshll.u32 %s218_s8, 3 }
  0x26   : > { %s1745_s0 = sld [smem:[#allocation26_spill]]  ;;  %s220_s9 = scalar_lea.vmem [#allocation3], %s667_s13 }
  0x27   : > { %s227_s11 = sshll.u32 %s220_s9, 4  ;;  %p1403_p13 = pnand %p864_p12, %p1357_p3  ;;  %s1399_s11 = int_to_ptr.vmem [resolvable:$true] %s227_s11 }
  0x28   : > { %p1409_p0 = pnand %p864_p12, %p1379_p10  ;;  %s1413_s4 = scalar_lea.sflag [#allocation4], %s216_s12 }
  0x29   : > { %p992_p2 = pneg %p1403_p13 }
  0x2a   : > { %s1747_s2 = scalar_select %p1409_p0, 1, 0 }
  0x2c   : > { %s1397_s27 = scalar_lea.hbm %s1745_s0, %s668_s28  ;;  %s995_s13 = scalar_lea.hbm %s1745_s0, 384 }
  0x2d   : > { %s990_s28 = scalar_lea.hbm %s1397_s27, 128  ;;  %p996_p6 = scmp.lt.u32.totalorder %s1397_s27, %s1745_s0 }
  0x2e   : > { %p991_p1 = scmp.ne.s32.totalorder %s1397_s27, %s990_s28  ;;  %p997_p7 = scmp.lt.u32.totalorder %s995_s13, %s990_s28 }
  0x2f   : > { %p999_p10 = scmp.lt.u32.totalorder %s990_s28, %s1397_s27 }
  0x30   : > { %p993_p5 = pnand %p992_p2, %p991_p1  ;;  %p998_p8 = por %p997_p7, %p996_p6 }
  0x32   : > { %p994_p3 = pneg %p993_p5  ;;  %p1000_p11 = por %p999_p10, %p998_p8 }
  0x34   : > { %p1001_p12 = pnand %p1000_p11, %p994_p3 }
  0x36   : > { %1004 = shalt.err (!%p1001_p12)
}
  0x37   : > { %s1005_s16 = scalar_lea.vmem %s1399_s11, 128  ;;  %s1234_s12 = smov [#allocation3]  }
  0x38   : > { %p1006_p1 = scmp.ne.s32.totalorder %s1399_s11, %s1005_s16  ;;  %s1010_s9 = sshll.u32 %s1234_s12, 4  ;;  %s1011_s9 = int_to_ptr.vmem [resolvable:$false] %s1010_s9 }
  0x39   : > { %s1012_s8 = scalar_lea.vmem %s1011_s9, 256  ;;  %p1013_p4 = scmp.lt.s32.totalorder %s1399_s11, %s1011_s9 }
  0x3a   : > { %p1008_p5 = pnand %p1006_p1, %p992_p2  ;;  %p1014_p6 = scmp.lt.s32.totalorder %s1012_s8, %s1005_s16 }
  0x3c   : > { %p1009_p9 = pneg %p1008_p5  ;;  %p1015_p7 = por %p1014_p6, %p1013_p4 }
  0x3e   : > { %p1016_p8 = pnand %p1015_p7, %p1009_p9 }
  0x40   : > { %1019 = shalt.err (!%p1016_p8)
}
  0x41   : > { %855 = dma.hbm_to_vmem [thread:$0]  (!%p1403_p13), %s1397_s27, 128, %s1399_s11, %s1413_s4  }
  0x42   : > { %s1442_s28 = sadd.s32 4294967295, %s1232_s6   ;;  %s663_s7 = sadd.s32 4294967294, %s1232_s6  }
  0x43   : > { %p1721_p4 = scmp.eq.s32.totalorder %s1442_s28, 0  ;;  %p173_p9 = scmp.ne.s32.totalorder %s1188_s20, %s1184_s19 }
  0x44   : > { %p174_p2 = scmp.eq.s32.totalorder %s1442_s28, 8  ;;  %p1748_p3 = scmp.ne.s32.totalorder %s1208_s25, %s1204_s24 }
  0x45   : > { %p1750_p13 = scmp.ne.s32.totalorder %s1196_s22, %s1192_s21  ;;  %p179_p1 = scmp.ne.s32.totalorder %s1184_s19, %s1180_s18 }
  0x46   : > { %p1454_p10 = por %p1721_p4, %p1748_p3  ;;  %p1467_p12 = por %p174_p2, %p173_p9 }
  0x47   : > { %p1463_p11 = por %p1750_p13, %p1721_p4  ;;  %p180_p5 = scmp.eq.s32.totalorder %s663_s7, 8 }
  0x48   : > { %s1749_s10 = scalar_select %p1454_p10, 1, 0 }
  0x49   : > { %s1751_s27 = scalar_select %p1463_p11, 1, 0 }
  0x4a   : > { %s1752_s11 = scalar_select %p1467_p12, 1, 0 }
  0x4b   : > { %p664_p6 = scmp.ge.s32.totalorder %s1232_s6, 1  ;;  %p187_p7 = scmp.lt.s32.totalorder %s1232_s6, 10 }
  0x4c   : > { %p1475_p8 = por %p180_p5, %p179_p1  ;;  %s1235_s21 = smov [#allocation6]  }
  0x4d   : > { %p1479_p3 = pnand %p664_p6, %p187_p7  ;;  %s199_s14 = sshll.u32 %s1235_s21, 4  ;;  %s1483_s14 = int_to_ptr.vmem [resolvable:$true] %s199_s14 }
  0x4e   : > { %s1753_s24 = scalar_select %p1475_p8, 1, 0 }
  0x4f   : > { %s1754_s13 = scalar_select %p1479_p3, 1, 0 }
  0x50   : > { %p848_p9 = pneg %p1479_p3  ;;  %s236_s15 = sand.u32 1, %s1200_s23  }
  0x51   : > { %s684_s16 = sshll.u32 %s1224_s29, 11  ;;  %s669_s9 = sshll.u32 %s236_s15, 7 }
  0x52   : > { %p1491_p2 = pnand %p848_p9, %p1721_p4  ;;  %s1498_s0 = scalar_lea.hbm %s1709_s3, %s684_s16 }
  0x53   : > { %s238_s30 = scalar_lea.vmem [#allocation8], %s669_s9  ;;  %s1020_s5 = scalar_lea.hbm %s1707_s1, 2048 }
  0x54   : > { %s245_s21 = sshll.u32 %s238_s30, 4  ;;  %p1021_p13 = scmp.ne.s32.totalorder %s1707_s1, %s1020_s5  ;;  %s1524_s21 = int_to_ptr.vmem [resolvable:$true] %s245_s21 }
  0x55   : > { %p1022_p1 = pneg %p1491_p2  ;;  %p1027_p7 = scmp.lt.u32.totalorder %s1020_s5, %s1707_s1 }
  0x57   : > { %p1023_p5 = pnand %p1022_p1, %p1021_p13 }
  0x59   : > { %p1024_p6 = pneg %p1023_p5 }
  0x5b   : > { %p1029_p9 = pnand %p1027_p7, %p1024_p6 }
  0x5d   : > { %1032 = shalt.err (!%p1029_p9)
}
  0x5e   : > { %s1033_s30 = scalar_lea.vmem %s1483_s14, 2048  ;;  %p1041_p11 = scmp.lt.s32.totalorder %s1483_s14, %s1483_s14 }
  0x5f   : > { %p1034_p4 = scmp.ne.s32.totalorder %s1483_s14, %s1033_s30  ;;  %p1042_p10 = scmp.lt.s32.totalorder %s1033_s30, %s1033_s30 }
  0x61   : > { %p1036_p8 = pnand %p1034_p4, %p1022_p1  ;;  %p1043_p3 = por %p1042_p10, %p1041_p11 }
  0x63   : > { %p1037_p12 = pneg %p1036_p8 }
  0x65   : > { %p1044_p0 = pnand %p1043_p3, %p1037_p12 }
  0x67   : > { %1047 = shalt.err (!%p1044_p0)
}
  0x68   : > { %s1236_s23 = smov 128   ;;  %s1237_s5 = smov 8  }
  0x69   : > { %851 = dma.hbm_to_vmem [thread:$0]  (!%p1491_p2), %s1707_s1, 2048, %s1483_s14, [#allocation7], %s1236_s23, %s1236_s23, %s1237_s5  }
  0x6a   : > { %s1048_s29 = scalar_lea.hbm %s1498_s0, 2048  ;;  %p1756_p4 = scmp.ne.s32.totalorder %s1747_s2, 0 }
  0x6b   : > { %p1049_p0 = scmp.ne.s32.totalorder %s1498_s0, %s1048_s29  ;;  %s1053_s12 = scalar_lea.hbm %s1709_s3, 6144 }
  0x6c   : > { %p1050_p10 = pneg %p1756_p4  ;;  %p1054_p8 = scmp.lt.u32.totalorder %s1498_s0, %s1709_s3 }
  0x6d   : > { %p1055_p3 = scmp.lt.u32.totalorder %s1053_s12, %s1048_s29  ;;  %p1057_p13 = scmp.lt.u32.totalorder %s1048_s29, %s1498_s0 }
  0x6e   : > { %p1051_p11 = pnand %p1050_p10, %p1049_p0 }
  0x6f   : > { %p1056_p2 = por %p1055_p3, %p1054_p8 }
  0x70   : > { %p1052_p12 = pneg %p1051_p11 }
  0x71   : > { %p1058_p1 = por %p1057_p13, %p1056_p2 }
  0x73   : > { %p1059_p5 = pnand %p1058_p1, %p1052_p12 }
  0x75   : > { %1062 = shalt.err (!%p1059_p5)
}
  0x76   : > { %s1063_s14 = scalar_lea.vmem %s1524_s21, 2048  ;;  %s1238_s7 = smov [#allocation8]  }
  0x77   : > { %p1064_p6 = scmp.ne.s32.totalorder %s1524_s21, %s1063_s14  ;;  %s1068_s15 = sshll.u32 %s1238_s7, 4  ;;  %s1069_s15 = int_to_ptr.vmem [resolvable:$false] %s1068_s15 }
  0x78   : > { %s1070_s30 = scalar_lea.vmem %s1069_s15, 4096  ;;  %p1071_p0 = scmp.lt.s32.totalorder %s1524_s21, %s1069_s15 }
  0x79   : > { %p1066_p7 = pnand %p1064_p6, %p1050_p10  ;;  %p1072_p11 = scmp.lt.s32.totalorder %s1070_s30, %s1063_s14 }
  0x7b   : > { %p1067_p9 = pneg %p1066_p7  ;;  %p1073_p8 = por %p1072_p11, %p1071_p0 }
  0x7d   : > { %p1074_p3 = pnand %p1073_p8, %p1067_p9 }
  0x7f   : > { %1077 = shalt.err (!%p1074_p3)
}
  0x80   : > { %858 = dma.hbm_to_vmem [thread:$0]  (!%p1756_p4), %s1498_s0, 2048, %s1524_s21, %s1413_s4, %s1236_s23, %s1236_s23, %s1237_s5  }
  0x81   : > { %p1757_p10 = scmp.ne.s32.totalorder %s1754_s13, 0 }
  0x82   : > { %s265_s20 = sand.u32 (!%p1757_p10), 1, %s1442_s28   ;;  %s267_s26 = sand.u32 (!%p1757_p10), 1, %s1208_s25  }
  0x83   : > { %263 = sbr.rel (%p1757_p10) target bundleno = 722 (0x2d2), region = 40  ;;  %s1559_s29 = sshll.u32 (!%p1757_p10), %s267_s26, 3 }
  0x84   : > { %s266_s17 = scalar_lea.sflag (!%p1757_p10), [#allocation4], %s265_s20  ;;  %s269_s2 = scalar_lea.vmem (!%p1757_p10), [#allocation3], %s1559_s29 }
  0x85   : > { %p1758_p12 = scmp.ne.s32.totalorder (!%p1757_p10), %s1749_s10, 0 }
  0x8a   : > { %1163 = dma.done.wait (%p1758_p12), %s266_s17, 128  }
  0x8b   : > { %1165 = vsyncadd (%p1758_p12), %s266_s17, 4294967168  ;;  %p1759_p4 = scmp.eq.s32.totalorder %s1442_s28, 0 }
  0x8d   : > { %1167 = dma.done.wait (%p1759_p4), [#allocation7], 2048   ;;  %p1760_p2 = pmov %p1759_p4 }
  0x8e   : > { %s280_s0 = sand.u32 1, %s1196_s22   ;;  %p1761_p13 = scmp.ne.s32.totalorder %s1751_s27, 0 }
  0x8f   : > { %1169 = vsyncadd (%p1760_p2), [#allocation7], 4294965248  ;;  %s675_s4 = sshll.u32 %s280_s0, 7 }
  0x90   : > { %s1571_s13 = scalar_lea.vmem [#allocation8], %s675_s4 }
  0x91   : > { %1171 = dma.done.wait (%p1761_p13), %s266_s17, 2048  }
  0x92   : > { %1173 = vsyncadd (%p1761_p13), %s266_s17, 4294965248  ;;  %s1762_s10 = sld [smem:[#allocation17_spill]]  ;;  %s314_s21 = sand.u32 1, %s1184_s19  }
  0x93   : > { %s1581_s28 = sshll.u32 %s314_s21, 3  ;;  %s1763_s12 = sld [smem:[#allocation28_spill]] }
  0x94   : > { %s316_s8 = scalar_lea.vmem [#allocation9], %s1581_s28 }
  0x98   : > { %p318_p1 = scmp.lt.s32.totalorder %s1762_s10, 2  ;;  %p677_p5 = scmp.ne.s32.totalorder %s1762_s10, 0 }
  0x99   : > { %v326_v0 = vld [vmem:[#allocation6] sm:$0xff] (!%p677_p5)  ;;  %v327_v1 = vld [vmem:[#allocation6 + $0x8] sm:$0xff] (!%p677_p5)  ;;  %v328_v2 = vld [vmem:[#allocation6 + $0x10] sm:$0xff] (!%p677_p5)  ;;  %v1239_v3 = vmov (!%p677_p5), 0.0|0.0   ;;  %vm1240_vm0 = vmmov (!%p677_p5), 0   ;;  %v1241_v6 = vmov (!%p677_p5), 0.0  }
  0x9a   : > { %s1584_s23 = scalar_select %p318_p1, %s1762_s10, 2 }
  0x9b   : > { %324 = sbr.rel (%p677_p5) target bundleno = 428 (0x1ac), region = 56  ;;  %789 = vmatprep.subr.bf16.mxu0 (!%p677_p5), %v1239_v3  ;;  %v790_v4 = vpack.c.bf16 (!%p677_p5), %v327_v1, %v326_v0  ;;  %v329_v5 = vld [vmem:[#allocation6 + $0x18] sm:$0xff] (!%p677_p5)  ;;  %751 = vmatprep.mubr.msk.f32.mxu0 (!%p677_p5), %vm1240_vm0, %v1241_v6  ;;  %v330_v8 = vld [vmem:[#allocation6 + $0x20] sm:$0xff] (!%p677_p5)  ;;  %v331_v9 = vld [vmem:[#allocation6 + $0x28] sm:$0xff] (!%p677_p5)  ;;  %s1764_s7 = sld [smem:[#allocation27_spill]] (!%p677_p5) }
  0x9c   : > { %s320_s9 = scalar_lea.vmem %s1763_s12, %s1584_s23  ;;  %v793_v7 = vpack.c.bf16 (!%p677_p5), %v329_v5, %v328_v2  ;;  %v796_v10 = vpack.c.bf16 (!%p677_p5), %v331_v9, %v330_v8  ;;  %v332_v11 = vld [vmem:[#allocation6 + $0x30] sm:$0xff] (!%p677_p5)  ;;  %v333_v12 = vld [vmem:[#allocation6 + $0x38] sm:$0xff] (!%p677_p5)  ;;  %v334_v14 = vld [vmem:[#allocation6 + $0x40] sm:$0xff] (!%p677_p5) }
  0x9d   : > { %791 = vmatpush3.bf16.msra.mxu0 (!%p677_p5), %v790_v4  ;;  %v799_v13 = vpack.c.bf16 (!%p677_p5), %v333_v12, %v332_v11  ;;  %v335_v15 = vld [vmem:[#allocation6 + $0x48] sm:$0xff] (!%p677_p5)  ;;  %v336_v17 = vld [vmem:[#allocation6 + $0x50] sm:$0xff] (!%p677_p5)  ;;  %v337_v18 = vld [vmem:[#allocation6 + $0x58] sm:$0xff] (!%p677_p5) }
  0x9e   : > { %792 = vmatprep.subr.bf16.mxu0 (!%p677_p5), %v1239_v3  ;;  %v802_v16 = vpack.c.bf16 (!%p677_p5), %v335_v15, %v334_v14  ;;  %v805_v19 = vpack.c.bf16 (!%p677_p5), %v337_v18, %v336_v17  ;;  %v338_v20 = vld [vmem:[#allocation6 + $0x60] sm:$0xff] (!%p677_p5)  ;;  %v339_v21 = vld [vmem:[#allocation6 + $0x68] sm:$0xff] (!%p677_p5)  ;;  %v340_v23 = vld [vmem:[#allocation6 + $0x70] sm:$0xff] (!%p677_p5) }
  0x9f   : > { %v808_v22 = vpack.c.bf16 (!%p677_p5), %v339_v21, %v338_v20  ;;  %v341_v24 = vld [vmem:[#allocation6 + $0x78] sm:$0xff] (!%p677_p5) }
  0xa0   : > { %v811_v25 = vpack.c.bf16 (!%p677_p5), %v341_v24, %v340_v23  ;;  %v325_v26 = vld [vmem:[%s269_s2] sm:$0xff] (!%p677_p5) }
  0xa1   : > { %794 = vmatpush3.bf16.msra.mxu0 (!%p677_p5), %v793_v7  ;;  %v678_v27 = vld [vmem:[%s1764_s7] ss:$0 sm:$0xff] (!%p677_p5) }
  0xa2   : > { %795 = vmatprep.subr.bf16.mxu0 %v1239_v3 }
  0xa5   : > { %797 = vmatpush3.bf16.msra.mxu0 %v796_v10 }
  0xa6   : > { %798 = vmatprep.subr.bf16.mxu0 %v1239_v3 }
  0xa9   : > { %800 = vmatpush3.bf16.msra.mxu0 %v799_v13 }
  0xaa   : > { %801 = vmatprep.subr.bf16.mxu0 %v1239_v3 }
  0xad   : > { %803 = vmatpush3.bf16.msra.mxu0 %v802_v16 }
  0xae   : > { %804 = vmatprep.subr.bf16.mxu0 %v1239_v3 }
  0xb1   : > { %806 = vmatpush3.bf16.msra.mxu0 %v805_v19 }
  0xb2   : > { %807 = vmatprep.subr.bf16.mxu0 %v1239_v3 }
  0xb5   : > { %809 = vmatpush3.bf16.msra.mxu0 %v808_v22 }
  0xb6   : > { %810 = vmatprep.subr.bf16.mxu0 %v1239_v3 }
  0xb9   : > { %812 = vmatpush3.bf16.msra.mxu0 %v811_v25 }
  0xbc   : > { %752 = vmatmul.mubr.f32.vlgmr.msra.gmra.mrb[0].mxu0 %v325_v26 }
 0x18f   : > { %v415_v28 = vpop.f32.mrb[0].mxu0 }
 0x190   : > { %v416_v29 = vadd.f32 %v678_v27, %v415_v28  ;;  %v753_v30 = vpop.f32.mrb[1].mxu0 }
 0x192   : > { %v420_v31 = vmul.f32 0.044715, %v416_v29  ;;  %v419_v37 = vmul.f32 0.5, %v416_v29 }
 0x194   : > { %v421_v32 = vmul.f32 %v420_v31, %v416_v29 }
 0x196   : > { %v422_v33 = vmul.f32 %v421_v32, %v416_v29 }
 0x198   : > { %v423_v34 = vadd.f32 %v422_v33, %v416_v29 }
 0x19a   : > { %v424_v35 = vmul.f32 0.7978846, %v423_v34 }
 0x19c   : > { %988 = vtanh.f32 %v424_v35 }
 0x1a6   : > { %v989_v36 = vpop.eup %988 }
 0x1a7   : > { %v426_v38 = vadd.f32 1.0, %v989_v36 }
 0x1a9   : > { %v427_v39 = vmul.f32 %v426_v38, %v419_v37 }
 0x1ab   : > { %428 = vst [vmem:[#allocation2] sm:$0xff] %v427_v39 }
 0x1ac PF: > { %v430_v40 = vld [vmem:[%s1571_s13] sm:$0xff]  ;;  %v431_v41 = vld [vmem:[%s1571_s13 + $0x8] sm:$0xff]  ;;  %v1242_v42 = vmov 0.0|0.0   ;;  %vm1243_vm1 = vmmov 0   ;;  %v1244_v44 = vmov 0.0   ;;  %v432_v45 = vld [vmem:[%s1571_s13 + $0x10] sm:$0xff] }
 0x1ad   : > { %813 = vmatprep.subr.bf16.mxu0 %v1242_v42  ;;  %v814_v43 = vpack.c.bf16 %v431_v41, %v430_v40  ;;  %786 = vmatprep.mubr.msk.f32.mxu0 %vm1243_vm1, %v1244_v44  ;;  %v433_v46 = vld [vmem:[%s1571_s13 + $0x18] sm:$0xff]  ;;  %v434_v48 = vld [vmem:[%s1571_s13 + $0x20] sm:$0xff]  ;;  %v435_v49 = vld [vmem:[%s1571_s13 + $0x28] sm:$0xff]  ;;  %s1765_s15 = sld [smem:[#allocation18_spill]]  ;;  %s1766_s30 = sld [smem:[#allocation17_spill]] }
 0x1ae   : > { %v817_v47 = vpack.c.bf16 %v433_v46, %v432_v45  ;;  %v820_v50 = vpack.c.bf16 %v435_v49, %v434_v48  ;;  %v436_v51 = vld [vmem:[%s1571_s13 + $0x30] sm:$0xff]  ;;  %v437_v52 = vld [vmem:[%s1571_s13 + $0x38] sm:$0xff]  ;;  %v438_v54 = vld [vmem:[%s1571_s13 + $0x40] sm:$0xff]  ;;  %s540_s4 = sshll.u32 %s316_s8, 4  ;;  %s1768_s5 = sld [smem:[#allocation29_spill]]  ;;  %s1627_s4 = int_to_ptr.vmem [resolvable:$true] %s540_s4 }
 0x1af   : > { %815 = vmatpush3.bf16.xpose.msra.mxu0 %v814_v43  ;;  %v823_v53 = vpack.c.bf16 %v437_v52, %v436_v51  ;;  %v439_v55 = vld [vmem:[%s1571_s13 + $0x48] sm:$0xff]  ;;  %v440_v57 = vld [vmem:[%s1571_s13 + $0x50] sm:$0xff]  ;;  %v441_v58 = vld [vmem:[%s1571_s13 + $0x58] sm:$0xff]  ;;  %s525_s23 = scalar_lea.sflag [#allocation5], %s314_s21  ;;  %s1078_s12 = scalar_lea.vmem %s1627_s4, 128 }
 0x1b0   : > { %816 = vmatprep.subr.bf16.mxu0 %v1242_v42  ;;  %v826_v56 = vpack.c.bf16 %v439_v55, %v438_v54  ;;  %v829_v59 = vpack.c.bf16 %v441_v58, %v440_v57  ;;  %v442_v60 = vld [vmem:[%s1571_s13 + $0x60] sm:$0xff]  ;;  %v443_v61 = vld [vmem:[%s1571_s13 + $0x68] sm:$0xff]  ;;  %v444_v63 = vld [vmem:[%s1571_s13 + $0x70] sm:$0xff]  ;;  %p1079_p6 = scmp.ne.s32.totalorder %s1627_s4, %s1078_s12  ;;  %p1769_p7 = scmp.ne.s32.totalorder %s1752_s11, 0 }
 0x1b1   : > { %v832_v62 = vpack.c.bf16 %v443_v61, %v442_v60  ;;  %v445_v0 = vld [vmem:[%s1571_s13 + $0x78] sm:$0xff]  ;;  %v679_v3 = vld [vmem:[%s320_s9] ss:$0 sm:$0xff]  ;;  %s1245_s9 = smov [#allocation9]  }
 0x1b2   : > { %v835_v1 = vpack.c.bf16 %v445_v0, %v444_v63  ;;  %v429_v2 = vld [vmem:[#allocation2] sm:$0xff]  ;;  %p1080_p9 = pnand %p1079_p6, %p1769_p7  ;;  %s1082_s27 = sshll.u32 %s1245_s9, 4  ;;  %s1083_s27 = int_to_ptr.vmem [resolvable:$false] %s1082_s27 }
 0x1b3   : > { %s837_s20 = smul.u32 3, %s1765_s15  ;;  %s1084_s14 = scalar_lea.vmem %s1083_s27, 256 }
 0x1b4   : > { %p1081_p0 = pneg %p1080_p9  ;;  %p1085_p11 = scmp.lt.s32.totalorder %s1627_s4, %s1083_s27 }
 0x1b5   : > { %s536_s26 = sadd.s32 %s1766_s30, %s837_s20  ;;  %p1086_p8 = scmp.lt.s32.totalorder %s1084_s14, %s1078_s12 }
 0x1b6   : > { %s681_s0 = sshll.u32 %s536_s26, 7 }
 0x1b7   : > { %818 = vmatpush3.bf16.xpose.msra.mxu0 %v817_v47  ;;  %s1625_s16 = scalar_lea.hbm %s1768_s5, %s681_s0  ;;  %p1087_p3 = por %p1086_p8, %p1085_p11 }
 0x1b8   : > { %819 = vmatprep.subr.bf16.mxu0 %v1242_v42 }
 0x1b9   : > { %p1088_p10 = pnand %p1087_p3, %p1081_p0 }
 0x1bf   : > { %821 = vmatpush3.bf16.xpose.msra.mxu0 %v820_v50 }
 0x1c0   : > { %822 = vmatprep.subr.bf16.mxu0 %v1242_v42 }
 0x1c7   : > { %824 = vmatpush3.bf16.xpose.msra.mxu0 %v823_v53 }
 0x1c8   : > { %825 = vmatprep.subr.bf16.mxu0 %v1242_v42 }
 0x1cf   : > { %827 = vmatpush3.bf16.xpose.msra.mxu0 %v826_v56 }
 0x1d0   : > { %828 = vmatprep.subr.bf16.mxu0 %v1242_v42 }
 0x1d7   : > { %830 = vmatpush3.bf16.xpose.msra.mxu0 %v829_v59 }
 0x1d8   : > { %831 = vmatprep.subr.bf16.mxu0 %v1242_v42 }
 0x1df   : > { %833 = vmatpush3.bf16.xpose.msra.mxu0 %v832_v62 }
 0x1e0   : > { %834 = vmatprep.subr.bf16.mxu0 %v1242_v42 }
 0x1e7   : > { %836 = vmatpush3.bf16.xpose.msra.mxu0 %v835_v1 }
 0x1ee   : > { %787 = vmatmul.mubr.f32.vlgmr.msra.gmra.mrb[0].mxu0 %v429_v2 }
 0x2c1   : > { %v519_v4 = vpop.f32.mrb[0].mxu0 }
 0x2c2   : > { %v520_v5 = vadd.f32 %v679_v3, %v519_v4  ;;  %v788_v6 = vpop.f32.mrb[1].mxu0 }
 0x2c4   : > { %523 = vst [vmem:[%s316_s8] sm:$0xff] %v520_v5 }
 0x2c5   : > { %1091 = shalt.err (!%p1088_p10)
}
 0x2c6   : > { %s1092_s21 = scalar_lea.hbm %s1625_s16, 128  ;;  %s1096_s7 = scalar_lea.hbm %s1768_s5, 1152 }
 0x2c7   : > { %p1093_p12 = scmp.ne.s32.totalorder %s1625_s16, %s1092_s21  ;;  %p1097_p13 = scmp.lt.u32.totalorder %s1625_s16, %s1768_s5 }
 0x2c8   : > { %p1098_p1 = scmp.lt.u32.totalorder %s1096_s7, %s1092_s21  ;;  %p1100_p6 = scmp.lt.u32.totalorder %s1092_s21, %s1625_s16 }
 0x2c9   : > { %p1094_p4 = pnand %p1093_p12, %p1769_p7 }
 0x2ca   : > { %p1099_p5 = por %p1098_p1, %p1097_p13 }
 0x2cb   : > { %p1095_p2 = pneg %p1094_p4 }
 0x2cc   : > { %p1101_p9 = por %p1100_p6, %p1099_p5 }
 0x2ce   : > { %p1102_p0 = pnand %p1101_p9, %p1095_p2 }
 0x2d0   : > { %1105 = shalt.err (!%p1102_p0)
}
 0x2d1   : > { %846 = dma.vmem_to_hbm [thread:$0]  (%p1769_p7), %s1627_s4, 128, %s1625_s16, %s525_s23  }
 0x2d2 PF: > { %p866_p11 = scmp.ge.s32.totalorder %s1232_s6, 2  ;;  %s552_s20 = sand.u32 1, %s1180_s18  }
 0x2d3   : > { %p1770_p8 = scmp.ne.s32.totalorder %s1753_s24, 0  ;;  %s553_s26 = scalar_lea.sflag [#allocation5], %s552_s20 }
 0x2d5   : > { %p860_p3 = pnand %p866_p11, %p1770_p8 }
 0x2d7   : > { %1175 = dma.done.wait (!%p860_p3), %s553_s26, 128  }
 0x2d8   : > { %1177 = vsyncadd (!%p860_p3), %s553_s26, 4294967168  ;;  %s22_s6 = sadd.s32 1, %s1232_s6   ;;  %s1772_s11 = sld [smem:[#allocation14_spill]] }
 0x2d9   : > { %p1659_p10 = scmp.ge.s32.totalorder %s22_s6, 11   ;;  %s1773_s20 = sld [smem:[#allocation25_spill]] }
 0x2da   : > { %s1774_s17 = sld [smem:[#allocation15_spill]]  ;;  %s1775_s23 = sld [smem:[#allocation23_spill]] }
 0x2db   : > { %s1776_s2 = sld [smem:[#allocation16_spill]]  ;;  %s1777_s26 = sld [smem:[#allocation24_spill]] }
 0x2dc   : > { %s1778_s27 = sld [smem:[#allocation19_spill]]  ;;  %s1779_s28 = sld [smem:[#allocation20_spill]] }
 0x2dd   : > { %s1780_s0 = sld [smem:[#allocation21_spill]]  ;;  %s1781_s30 = sld [smem:[#allocation22_spill]] }
 0x2de   : > { %s1783_s18 = smov %s1184_s19  ;;  %s1784_s19 = smov %s1772_s11 }
 0x2df   : > { %s1785_s21 = smov %s1196_s22  ;;  %s1787_s24 = smov %s1208_s25 }
 0x2e0   : > { %s1786_s22 = smov %s1774_s17  ;;  %21 = sbr.rel (!%p1659_p10) target bundleno = 16 (0x10), region = 107 }
 0x2e1   : > { %s1788_s25 = smov %s1776_s2 }
 0x2e3   : > { %s1789_s29 = smov %s1780_s0 }
 0x2e7   :  { %558 = vsyncpa [#allocation4], 1 }
 0x2e8   :  { %560 = vsyncpa [#allocation4 + $0x1], 1 }
 0x2e9   :  { %561 = vsyncpa [#allocation7], 1 }
 0x2ea   :  { %562 = vsyncpa [#allocation5], 1 }
 0x2eb   :  { %564 = vsyncpa [#allocation5 + $0x1], 1 }

</bundles_post_ra>
